<compile_context>
chip_gen: v7x
topology: tpu7x:2x2x1
jax: 0.10.0
libtpu: 0.0.40
codegen_flags: <defaults>
</compile_context>

<pallas_src>
import numpy as np
import jax
import jax.numpy as jnp
from jax import lax
from jax.experimental import pallas as pl
from jax.experimental.pallas import tpu as pltpu


def _round_up(x, m):
    return ((x + m - 1) // m) * m


def _make_kernel(n_total, spc, tile_n):
    """Kernel closure over the real pixel count (tail masking) and grid geometry."""

    def kernel(tgt_ref, logits_ref, img_ref, s1_ref, s2_ref, sel_ref, lse_ref):
        p = pl.program_id(0)          # parallel chunk (TensorCore)
        s = pl.program_id(1)          # step along the pixel stream

        @pl.when(s == 0)
        def _init():
            s1_ref[...] = jnp.zeros_like(s1_ref)
            s2_ref[...] = jnp.zeros_like(s2_ref)
            sel_ref[...] = jnp.zeros_like(sel_ref)
            lse_ref[...] = jnp.zeros_like(lse_ref)

        c, tn = logits_ref.shape

        # Global lane index of this tile: mask the ragged tail in-kernel (no HBM-side padding).
        start = (p * spc + s) * tile_n
        col = lax.broadcasted_iota(jnp.int32, (1, tn), 1)
        valid = (start + col) < n_total                                        # (1, tn) bool

        # Clamp out-of-bounds lanes to finite values (stale VMEM may hold Inf/NaN).
        logits = jnp.where(valid, logits_ref[...].astype(jnp.float32), 0.0)    # (C, tn)
        img = jnp.where(valid, img_ref[...].astype(jnp.float32), 0.0)          # (K, tn)

        # One-hot class membership; out-of-range lanes drop out of every statistic.
        class_ids = lax.broadcasted_iota(jnp.int32, (c, tn), 0)
        onehot = ((class_ids == tgt_ref[...]) & valid).astype(jnp.float32)     # (C, tn)

        # Per-pixel logsumexp over the (sublane) class axis -- fully lane-dense VPU/EUP work.
        row_max = jnp.max(logits, axis=0, keepdims=True)                       # (1, tn)
        lse = row_max + jnp.log(jnp.sum(jnp.exp(logits - row_max), axis=0, keepdims=True))

        # Two tiny MXU dots contracting the lane-dense pixel axis (A @ B^T, flash-attn style).
        dn = (((1,), (1,)), ((), ()))
        s1_ref[...] += lax.dot_general(onehot, img, dn,
                                       preferred_element_type=jnp.float32)      # (C, K)
        s2_ref[...] += lax.dot_general(onehot, img * img, dn,
                                       preferred_element_type=jnp.float32)      # (C, K)

        # Cross-entropy pieces via lane reductions (outputs are tiny).
        sel_ref[...] += jnp.sum(onehot * logits, axis=1, keepdims=True)         # (C, 1)
        lse_ref[...] += jnp.sum(jnp.where(valid, lse, 0.0), axis=1, keepdims=True)  # (1, 1)

    return kernel


def color_consistency_loss(output, target, img, alpha_sal=0.3,
                           tile_n=32768, num_parallel=1):
    """output: (N, C) logits; target: (N,) int labels in [0, C); img: (H, W, K) with H*W == N.

    num_parallel: 1 for single-TensorCore chips (v5e/v6e); 2 on dual-TC chips (v7x/megacore).
    """
    n, c = output.shape
    h, w, k = img.shape
    assert h * w == n, "output/target rows must equal H*W of the image"

    # Channel-major (lane-dense) layouts: the big pixel axis rides the 128-lane minor dim.
    logits_cn = jnp.transpose(output)              # (C, N)
    img_kn = jnp.transpose(img.reshape(n, k))      # (K, N)
    tgt_row = target.reshape(1, n).astype(jnp.int32)

    # Largest lane-aligned tile keeping double-buffered inputs under ~8 MiB
    # (sublane-padded, f32 worst case) -- safe vs. 16 MiB (v5e) / 32 MiB (v6e, v7x) scoped VMEM.
    per_col_bytes = (_round_up(c, 8) + _round_up(k, 8) + 8) * 4 * 2
    budget = 8 * 1024 * 1024
    max_tile = max(128, (budget // per_col_bytes) // 128 * 128)
    tile_n = int(max(128, min(tile_n, max_tile, _round_up(n, 128))))

    total_tiles = pl.cdiv(n, tile_n)
    if num_parallel < 1 or total_tiles % num_parallel != 0:
        num_parallel = 1               # fall back to a single accumulator stream
    spc = total_tiles // num_parallel

    kernel = _make_kernel(n, spc, tile_n)

    out_shape = (
        jax.ShapeDtypeStruct((num_parallel, c, k), jnp.float32),   # sum of masked img
        jax.ShapeDtypeStruct((num_parallel, c, k), jnp.float32),   # sum of masked img^2
        jax.ShapeDtypeStruct((num_parallel, c, 1), jnp.float32),   # sum_i logits[i, target_i]
        jax.ShapeDtypeStruct((num_parallel, 1, 1), jnp.float32),   # sum_i logsumexp(logits_i)
    )

    cost = pl.CostEstimate(
        flops=int(2 * n * c * 2 * k + 10 * n * (c + k + 2)),
        transcendentals=int(n * (c + 1)),
        bytes_accessed=int(n * (c * output.dtype.itemsize + k * img.dtype.itemsize + 4)),
    )

    s1, s2, sel, lse = pl.pallas_call(
        kernel,
        out_shape=out_shape,
        grid_spec=pltpu.PrefetchScalarGridSpec(
            num_scalar_prefetch=0,
            grid=(num_parallel, spc),
            in_specs=[
                pl.BlockSpec((1, tile_n), lambda p, s: (0, p * spc + s)),   # target row (1, N)
                pl.BlockSpec((c, tile_n), lambda p, s: (0, p * spc + s)),   # logits (C, N)
                pl.BlockSpec((k, tile_n), lambda p, s: (0, p * spc + s)),   # image  (K, N)
            ],
            out_specs=[
                pl.BlockSpec((None, c, k), lambda p, s: (p, 0, 0)),
                pl.BlockSpec((None, c, k), lambda p, s: (p, 0, 0)),
                pl.BlockSpec((None, c, 1), lambda p, s: (p, 0, 0)),
                pl.BlockSpec((None, 1, 1), lambda p, s: (p, 0, 0)),
            ],
        ),
        compiler_params=pltpu.CompilerParams(
            dimension_semantics=("parallel", "arbitrary")),
        cost_estimate=cost,
    )(tgt_row, logits_cn, img_kn)

    # ---- tiny O(C*K) finalize in plain JAX ----
    s1 = jnp.sum(s1, axis=0)           # (C, K)
    s2 = jnp.sum(s2, axis=0)           # (C, K)
    sel_sum = jnp.sum(sel)             # sum_i logits[i, target_i]
    lse_sum = jnp.sum(lse)             # sum_i logsumexp(logits_i)

    inv_n = jnp.float32(1.0 / n)
    loss1 = (lse_sum - sel_sum) * inv_n                      # mean cross-entropy
    mean = s1 * inv_n
    var = jnp.maximum(s2 * inv_n - mean * mean, 0.0)         # population variance per class/chan
    loss2 = jax.nn.sigmoid(jnp.sum(jnp.sqrt(var)))
    return (1.0 - alpha_sal) * loss1 + alpha_sal * loss2


def _reference_loss(output, target, img, alpha_sal=0.3):
    # Pure-JAX replica of the PyTorch/numpy module.
    logits = output.astype(jnp.float32)
    lse = jax.scipy.special.logsumexp(logits, axis=-1)
    tgt_logit = jnp.take_along_axis(logits, target[:, None].astype(jnp.int32), axis=-1)[:, 0]
    loss1 = jnp.mean(lse - tgt_logit)

    _, c = output.shape
    img_flat = img.reshape(-1, img.shape[-1]).astype(jnp.float32)
    std_all = 0.0
    for l in range(c):  # absent labels contribute std = 0, same as the np.unique loop
        mask = (target == l).astype(jnp.float32)[:, None]
        std_all = std_all + jnp.sum(jnp.std(img_flat * mask, axis=0))
    loss2 = 1.0 / (1.0 + jnp.exp(-std_all))
    return (1.0 - alpha_sal) * loss1 + alpha_sal * loss2


if __name__ == "__main__":
    key = jax.random.PRNGKey(0)

    def _check(h, w, c_cls, k_ch, **kwargs):
        n = h * w
        k1, k2, k3 = jax.random.split(jax.random.fold_in(key, h * 31 + w + 7 * c_cls), 3)
        output = jax.random.normal(k1, (n, c_cls), dtype=jnp.float32)        # logits
        target = jax.random.randint(k2, (n,), 0, c_cls, dtype=jnp.int32)     # pixel labels
        img = jax.random.uniform(k3, (h, w, k_ch), dtype=jnp.float32)        # HWC image
        loss = jax.block_until_ready(
            color_consistency_loss(output, target, img, alpha_sal=0.3, **kwargs))
        ref = jax.block_until_ready(_reference_loss(output, target, img, alpha_sal=0.3))
        assert np.allclose(np.asarray(loss), np.asarray(ref), rtol=1e-4, atol=1e-4), \
            (h, w, float(np.asarray(loss)), float(np.asarray(ref)))

    _check(16, 16, 4, 3)                               # single tile, single step
    _check(32, 32, 4, 3, tile_n=256, num_parallel=2)   # multi-tile, 2-way parallel accumulators
    _check(18, 18, 5, 3, tile_n=256)                   # ragged N -> tail masked in-kernel (no HBM pad)
    print("KERNEL_OK")
</pallas_src>

<mosaic_0001>
module attributes {stable_mosaic.version = 11 : i64} {
  func.func @kernel(%arg0: i32, %arg1: i32, %arg2: memref<1x256xi32, #tpu.memory_space<vmem>>, %arg3: memref<4x256xf32, #tpu.memory_space<vmem>>, %arg4: memref<3x256xf32, #tpu.memory_space<vmem>>, %arg5: memref<1x4x3xf32, #tpu.memory_space<vmem>>, %arg6: memref<1x4x3xf32, #tpu.memory_space<vmem>>, %arg7: memref<1x4x1xf32, #tpu.memory_space<vmem>>, %arg8: memref<1x1x1xf32, #tpu.memory_space<vmem>>) attributes {dimension_semantics = [#tpu.dimension_semantics<parallel>, #tpu.dimension_semantics<arbitrary>], iteration_bounds = array<i64: 1, 1>, scalar_prefetch = 0 : i64, scratch_operands = 0 : i64, tpu.core_type = #tpu.core_type<tc>, window_params = [{transform_indices = @transform_0, window_bounds = array<i64: 1, 256>}, {transform_indices = @transform_1, window_bounds = array<i64: 4, 256>}, {transform_indices = @transform_2, window_bounds = array<i64: 3, 256>}, {transform_indices = @transform_3, window_bounds = array<i64: 1, 4, 3>}, {transform_indices = @transform_4, window_bounds = array<i64: 1, 4, 3>}, {transform_indices = @transform_5, window_bounds = array<i64: 1, 4, 1>}, {transform_indices = @transform_6, window_bounds = array<i64: 1, 1, 1>}]} {
    %c0_i32 = arith.constant 0 : i32
    %0 = arith.cmpi eq, %arg1, %c0_i32 : i32
    %1 = arith.extui %0 : i1 to i32
    %c0_i32_0 = arith.constant 0 : i32
    %2 = arith.cmpi ne, %1, %c0_i32_0 : i32
    scf.if %2 {
      %cst_39 = arith.constant 0.000000e+00 : f32
      %72 = vector.broadcast %cst_39 : f32 to vector<4x3xf32>
      %c0_40 = arith.constant 0 : index
      %c0_41 = arith.constant 0 : index
      %c0_42 = arith.constant 0 : index
      %73 = vector.load %arg5[%c0_40, %c0_41, %c0_42] : memref<1x4x3xf32, #tpu.memory_space<vmem>>, vector<1x4x3xf32>
      %74 = vector.shape_cast %73 : vector<1x4x3xf32> to vector<4x3xf32>
      %75 = vector.shape_cast %72 : vector<4x3xf32> to vector<1x4x3xf32>
      tpu.vector_store %arg5[%c0_40, %c0_41, %c0_42], %75 {strides = array<i32>} : memref<1x4x3xf32, #tpu.memory_space<vmem>>, vector<1x4x3xf32>,
      %cst_43 = arith.constant 0.000000e+00 : f32
      %76 = vector.broadcast %cst_43 : f32 to vector<4x3xf32>
      %c0_44 = arith.constant 0 : index
      %c0_45 = arith.constant 0 : index
      %c0_46 = arith.constant 0 : index
      %77 = vector.load %arg6[%c0_44, %c0_45, %c0_46] : memref<1x4x3xf32, #tpu.memory_space<vmem>>, vector<1x4x3xf32>
      %78 = vector.shape_cast %77 : vector<1x4x3xf32> to vector<4x3xf32>
      %79 = vector.shape_cast %76 : vector<4x3xf32> to vector<1x4x3xf32>
      tpu.vector_store %arg6[%c0_44, %c0_45, %c0_46], %79 {strides = array<i32>} : memref<1x4x3xf32, #tpu.memory_space<vmem>>, vector<1x4x3xf32>,
      %cst_47 = arith.constant 0.000000e+00 : f32
      %80 = vector.broadcast %cst_47 : f32 to vector<4x1xf32>
      %c0_48 = arith.constant 0 : index
      %c0_49 = arith.constant 0 : index
      %c0_50 = arith.constant 0 : index
      %81 = vector.load %arg7[%c0_48, %c0_49, %c0_50] : memref<1x4x1xf32, #tpu.memory_space<vmem>>, vector<1x4x1xf32>
      %82 = vector.shape_cast %81 : vector<1x4x1xf32> to vector<4x1xf32>
      %83 = vector.shape_cast %80 : vector<4x1xf32> to vector<1x4x1xf32>
      tpu.vector_store %arg7[%c0_48, %c0_49, %c0_50], %83 {strides = array<i32>} : memref<1x4x1xf32, #tpu.memory_space<vmem>>, vector<1x4x1xf32>,
      %cst_51 = arith.constant 0.000000e+00 : f32
      %84 = vector.broadcast %cst_51 : f32 to vector<1x1xf32>
      %c0_52 = arith.constant 0 : index
      %c0_53 = arith.constant 0 : index
      %c0_54 = arith.constant 0 : index
      %85 = vector.load %arg8[%c0_52, %c0_53, %c0_54] : memref<1x1x1xf32, #tpu.memory_space<vmem>>, vector<1x1x1xf32>
      %86 = vector.shape_cast %85 : vector<1x1x1xf32> to vector<1x1xf32>
      %87 = vector.shape_cast %84 : vector<1x1xf32> to vector<1x1x1xf32>
      tpu.vector_store %arg8[%c0_52, %c0_53, %c0_54], %87 {strides = array<i32>} : memref<1x1x1xf32, #tpu.memory_space<vmem>>, vector<1x1x1xf32>,
    } else {
    }
    %c1_i32 = arith.constant 1 : i32
    %3 = arith.muli %arg0, %c1_i32 : i32
    %4 = arith.addi %3, %arg1 : i32
    %c256_i32 = arith.constant 256 : i32
    %5 = arith.muli %4, %c256_i32 : i32
    %6 = tpu.iota {dimensions = array<i32: 1>} : vector<1x256xi32>
    %7 = vector.broadcast %5 : i32 to vector<1x256xi32>
    %8 = arith.addi %7, %6 : vector<1x256xi32>
    %c256_i32_1 = arith.constant 256 : i32
    %9 = vector.broadcast %c256_i32_1 : i32 to vector<1x256xi32>
    %10 = arith.cmpi slt, %8, %9 : vector<1x256xi32>
    %c0 = arith.constant 0 : index
    %c0_2 = arith.constant 0 : index
    %11 = vector.load %arg3[%c0, %c0_2] : memref<4x256xf32, #tpu.memory_space<vmem>>, vector<4x256xf32>
    %cst = arith.constant 0.000000e+00 : f32
    %12 = vector.shape_cast %10 : vector<1x256xi1> to vector<1x256xi1>
    %13 = vector.broadcast %12 : vector<1x256xi1> to vector<4x256xi1>
    %14 = vector.broadcast %cst : f32 to vector<4x256xf32>
    %15 = arith.select %13, %11, %14 : vector<4x256xi1>, vector<4x256xf32>
    %c0_3 = arith.constant 0 : index
    %c0_4 = arith.constant 0 : index
    %16 = vector.load %arg4[%c0_3, %c0_4] : memref<3x256xf32, #tpu.memory_space<vmem>>, vector<3x256xf32>
    %cst_5 = arith.constant 0.000000e+00 : f32
    %17 = vector.shape_cast %10 : vector<1x256xi1> to vector<1x256xi1>
    %18 = vector.broadcast %17 : vector<1x256xi1> to vector<3x256xi1>
    %19 = vector.broadcast %cst_5 : f32 to vector<3x256xf32>
    %20 = arith.select %18, %16, %19 : vector<3x256xi1>, vector<3x256xf32>
    %21 = tpu.iota {dimensions = array<i32: 0>} : vector<4x256xi32>
    %c0_6 = arith.constant 0 : index
    %c0_7 = arith.constant 0 : index
    %22 = vector.load %arg2[%c0_6, %c0_7] : memref<1x256xi32, #tpu.memory_space<vmem>>, vector<1x256xi32>
    %23 = vector.broadcast %22 : vector<1x256xi32> to vector<4x256xi32>
    %24 = arith.cmpi eq, %21, %23 : vector<4x256xi32>
    %25 = vector.broadcast %10 : vector<1x256xi1> to vector<4x256xi1>
    %26 = arith.andi %24, %25 : vector<4x256xi1>
    %27 = arith.extui %26 : vector<4x256xi1> to vector<4x256xi32>
    %28 = arith.sitofp %27 : vector<4x256xi32> to vector<4x256xf32>
    %cst_8 = arith.constant dense<0xFF800000> : vector<256xf32>
    %29 = vector.multi_reduction <maximumf>, %15, %cst_8 [0] : vector<4x256xf32> to vector<256xf32>
    %30 = vector.shape_cast %29 : vector<256xf32> to vector<1x256xf32>
    %31 = vector.broadcast %30 : vector<1x256xf32> to vector<4x256xf32>
    %32 = arith.subf %15, %31 : vector<4x256xf32>
    %33 = math.exp %32 : vector<4x256xf32>
    %cst_9 = arith.constant dense<0.000000e+00> : vector<256xf32>
    %34 = vector.multi_reduction <add>, %33, %cst_9 [0] : vector<4x256xf32> to vector<256xf32>
    %35 = vector.shape_cast %34 : vector<256xf32> to vector<1x256xf32>
    %36 = math.log %35 : vector<1x256xf32>
    %37 = arith.addf %30, %36 : vector<1x256xf32>
    %c0_10 = arith.constant 0 : index
    %c0_11 = arith.constant 0 : index
    %c0_12 = arith.constant 0 : index
    %38 = vector.load %arg5[%c0_10, %c0_11, %c0_12] : memref<1x4x3xf32, #tpu.memory_space<vmem>>, vector<1x4x3xf32>
    %39 = vector.shape_cast %38 : vector<1x4x3xf32> to vector<4x3xf32>
    %cst_13 = arith.constant dense<0.000000e+00> : vector<4x3xf32>
    %40 = tpu.matmul %28, %20, %cst_13 {dimension_numbers = #tpu.dot_dimension_numbers<[1], [1], [0], [0], [0, 0, 1, 0], [], []>} : vector<4x256xf32>, vector<3x256xf32>, vector<4x3xf32> -> vector<4x3xf32>
    %41 = arith.addf %39, %40 : vector<4x3xf32>
    %c0_14 = arith.constant 0 : index
    %c0_15 = arith.constant 0 : index
    %c0_16 = arith.constant 0 : index
    %42 = vector.load %arg5[%c0_14, %c0_15, %c0_16] : memref<1x4x3xf32, #tpu.memory_space<vmem>>, vector<1x4x3xf32>
    %43 = vector.shape_cast %42 : vector<1x4x3xf32> to vector<4x3xf32>
    %44 = vector.shape_cast %41 : vector<4x3xf32> to vector<1x4x3xf32>
    tpu.vector_store %arg5[%c0_14, %c0_15, %c0_16], %44 {strides = array<i32>} : memref<1x4x3xf32, #tpu.memory_space<vmem>>, vector<1x4x3xf32>,
    %c0_17 = arith.constant 0 : index
    %c0_18 = arith.constant 0 : index
    %c0_19 = arith.constant 0 : index
    %45 = vector.load %arg6[%c0_17, %c0_18, %c0_19] : memref<1x4x3xf32, #tpu.memory_space<vmem>>, vector<1x4x3xf32>
    %46 = vector.shape_cast %45 : vector<1x4x3xf32> to vector<4x3xf32>
    %47 = arith.mulf %20, %20 : vector<3x256xf32>
    %cst_20 = arith.constant dense<0.000000e+00> : vector<4x3xf32>
    %48 = tpu.matmul %28, %47, %cst_20 {dimension_numbers = #tpu.dot_dimension_numbers<[1], [1], [0], [0], [0, 0, 1, 0], [], []>} : vector<4x256xf32>, vector<3x256xf32>, vector<4x3xf32> -> vector<4x3xf32>
    %49 = arith.addf %46, %48 : vector<4x3xf32>
    %c0_21 = arith.constant 0 : index
    %c0_22 = arith.constant 0 : index
    %c0_23 = arith.constant 0 : index
    %50 = vector.load %arg6[%c0_21, %c0_22, %c0_23] : memref<1x4x3xf32, #tpu.memory_space<vmem>>, vector<1x4x3xf32>
    %51 = vector.shape_cast %50 : vector<1x4x3xf32> to vector<4x3xf32>
    %52 = vector.shape_cast %49 : vector<4x3xf32> to vector<1x4x3xf32>
    tpu.vector_store %arg6[%c0_21, %c0_22, %c0_23], %52 {strides = array<i32>} : memref<1x4x3xf32, #tpu.memory_space<vmem>>, vector<1x4x3xf32>,
    %c0_24 = arith.constant 0 : index
    %c0_25 = arith.constant 0 : index
    %c0_26 = arith.constant 0 : index
    %53 = vector.load %arg7[%c0_24, %c0_25, %c0_26] : memref<1x4x1xf32, #tpu.memory_space<vmem>>, vector<1x4x1xf32>
    %54 = vector.shape_cast %53 : vector<1x4x1xf32> to vector<4x1xf32>
    %55 = arith.mulf %28, %15 : vector<4x256xf32>
    %cst_27 = arith.constant dense<0.000000e+00> : vector<4xf32>
    %56 = vector.multi_reduction <add>, %55, %cst_27 [1] : vector<4x256xf32> to vector<4xf32>
    %57 = vector.shape_cast %56 : vector<4xf32> to vector<4x1xf32>
    %58 = arith.addf %54, %57 : vector<4x1xf32>
    %c0_28 = arith.constant 0 : index
    %c0_29 = arith.constant 0 : index
    %c0_30 = arith.constant 0 : index
    %59 = vector.load %arg7[%c0_28, %c0_29, %c0_30] : memref<1x4x1xf32, #tpu.memory_space<vmem>>, vector<1x4x1xf32>
    %60 = vector.shape_cast %59 : vector<1x4x1xf32> to vector<4x1xf32>
    %61 = vector.shape_cast %58 : vector<4x1xf32> to vector<1x4x1xf32>
    tpu.vector_store %arg7[%c0_28, %c0_29, %c0_30], %61 {strides = array<i32>} : memref<1x4x1xf32, #tpu.memory_space<vmem>>, vector<1x4x1xf32>,
    %c0_31 = arith.constant 0 : index
    %c0_32 = arith.constant 0 : index
    %c0_33 = arith.constant 0 : index
    %62 = vector.load %arg8[%c0_31, %c0_32, %c0_33] : memref<1x1x1xf32, #tpu.memory_space<vmem>>, vector<1x1x1xf32>
    %63 = vector.shape_cast %62 : vector<1x1x1xf32> to vector<1x1xf32>
    %cst_34 = arith.constant 0.000000e+00 : f32
    %64 = vector.broadcast %cst_34 : f32 to vector<1x256xf32>
    %65 = arith.select %10, %37, %64 : vector<1x256xi1>, vector<1x256xf32>
    %cst_35 = arith.constant dense<0.000000e+00> : vector<1xf32>
    %66 = vector.multi_reduction <add>, %65, %cst_35 [1] : vector<1x256xf32> to vector<1xf32>
    %67 = vector.shape_cast %66 : vector<1xf32> to vector<1x1xf32>
    %68 = arith.addf %63, %67 : vector<1x1xf32>
    %c0_36 = arith.constant 0 : index
    %c0_37 = arith.constant 0 : index
    %c0_38 = arith.constant 0 : index
    %69 = vector.load %arg8[%c0_36, %c0_37, %c0_38] : memref<1x1x1xf32, #tpu.memory_space<vmem>>, vector<1x1x1xf32>
    %70 = vector.shape_cast %69 : vector<1x1x1xf32> to vector<1x1xf32>
    %71 = vector.shape_cast %68 : vector<1x1xf32> to vector<1x1x1xf32>
    tpu.vector_store %arg8[%c0_36, %c0_37, %c0_38], %71 {strides = array<i32>} : memref<1x1x1xf32, #tpu.memory_space<vmem>>, vector<1x1x1xf32>,
    return
  }
  func.func @transform_0(%arg0: i32, %arg1: i32) -> (i32, i32) {
    %c1_i32 = arith.constant 1 : i32
    %0 = arith.muli %arg0, %c1_i32 : i32
    %1 = arith.addi %0, %arg1 : i32
    %c0_i32 = arith.constant 0 : i32
    %c0_i32_0 = arith.constant 0 : i32
    return %c0_i32, %1 : i32, i32
  }
  func.func @transform_1(%arg0: i32, %arg1: i32) -> (i32, i32) {
    %c1_i32 = arith.constant 1 : i32
    %0 = arith.muli %arg0, %c1_i32 : i32
    %1 = arith.addi %0, %arg1 : i32
    %c0_i32 = arith.constant 0 : i32
    %c0_i32_0 = arith.constant 0 : i32
    return %c0_i32, %1 : i32, i32
  }
  func.func @transform_2(%arg0: i32, %arg1: i32) -> (i32, i32) {
    %c1_i32 = arith.constant 1 : i32
    %0 = arith.muli %arg0, %c1_i32 : i32
    %1 = arith.addi %0, %arg1 : i32
    %c0_i32 = arith.constant 0 : i32
    %c0_i32_0 = arith.constant 0 : i32
    return %c0_i32, %1 : i32, i32
  }
  func.func @transform_3(%arg0: i32, %arg1: i32) -> (i32, i32, i32) {
    %c0_i32 = arith.constant 0 : i32
    %c0_i32_0 = arith.constant 0 : i32
    %c0_i32_1 = arith.constant 0 : i32
    return %arg0, %c0_i32, %c0_i32_0 : i32, i32, i32
  }
  func.func @transform_4(%arg0: i32, %arg1: i32) -> (i32, i32, i32) {
    %c0_i32 = arith.constant 0 : i32
    %c0_i32_0 = arith.constant 0 : i32
    %c0_i32_1 = arith.constant 0 : i32
    return %arg0, %c0_i32, %c0_i32_0 : i32, i32, i32
  }
  func.func @transform_5(%arg0: i32, %arg1: i32) -> (i32, i32, i32) {
    %c0_i32 = arith.constant 0 : i32
    %c0_i32_0 = arith.constant 0 : i32
    %c0_i32_1 = arith.constant 0 : i32
    return %arg0, %c0_i32, %c0_i32_0 : i32, i32, i32
  }
  func.func @transform_6(%arg0: i32, %arg1: i32) -> (i32, i32, i32) {
    %c0_i32 = arith.constant 0 : i32
    %c0_i32_0 = arith.constant 0 : i32
    %c0_i32_1 = arith.constant 0 : i32
    return %arg0, %c0_i32, %c0_i32_0 : i32, i32, i32
  }
}

</mosaic_0001>

<bundles_post_ra>
// kernel: tpu_custom_call.1
= control target key start
LH: loop header
LB: loop body
LE: loop exit
PB: predicated region body
PF: predicated region fallthrough
CT: control target
= control target key end

     0   :  { %12 = vsyncpa [#allocation3], 0  ;;  %s636_s0 = inlined_call_operand.hbm [shape: s32[1,256], index: 0, kind: input, shape index: {}]   ;;  %s637_s1 = inlined_call_operand.hbm [shape: f32[4,256], index: 1, kind: input, shape index: {}]   ;;  %s638_s2 = inlined_call_operand.hbm [shape: f32[3,256], index: 2, kind: input, shape index: {}]   ;;  %s639_s3 = inlined_call_operand.vmem [shape: f32[1,4,3], index: 3, kind: output, shape index: {0}]   ;;  %s640_s4 = inlined_call_operand.vmem [shape: f32[1,4,3], index: 4, kind: output, shape index: {1}]   ;;  %s641_s5 = inlined_call_operand.vmem [shape: f32[1,4,1], index: 5, kind: output, shape index: {2}]   ;;  %s642_s6 = inlined_call_operand.hbm [shape: f32[1,1,1], index: 6, kind: output, shape index: {3}]  }
   0x1   :  { %13 = vsyncpa [#allocation6], 0 }
   0x2   :  { %14 = vsyncpa [#allocation4], 0  ;;  %s482_s21 = smov [#allocation5]   ;;  %s483_s23 = smov [#allocation2]  }
   0x3   :  { %s39_s22 = sshll.u32 %s482_s21, 4  ;;  %s25_s24 = sshll.u32 %s483_s23, 4  ;;  %s40_s22 = int_to_ptr.vmem [resolvable:$true] %s39_s22  ;;  %s26_s24 = int_to_ptr.vmem [resolvable:$true] %s25_s24 }
   0x4   :  { %s388_s27 = scalar_lea.hbm %s637_s1, 128 }
   0x5   :  { %p389_p0 = scmp.ne.s32.totalorder %s637_s1, %s388_s27  ;;  %p392_p1 = scmp.lt.u32.totalorder %s388_s27, %s637_s1 }
   0x7   :  { %p394_p2 = pnand %p392_p1, %p389_p0 }
   0x9   :  { %397 = shalt.err (!%p394_p2)
}
   0xa   :  { %s398_s8 = scalar_lea.vmem %s40_s22, 128  ;;  %p403_p4 = scmp.lt.s32.totalorder %s40_s22, %s40_s22 }
   0xb   :  { %p399_p3 = scmp.ne.s32.totalorder %s40_s22, %s398_s8  ;;  %p404_p5 = scmp.lt.s32.totalorder %s398_s8, %s398_s8 }
   0xd   :  { %p405_p6 = por %p404_p5, %p403_p4 }
   0xf   :  { %p406_p7 = pnand %p405_p6, %p399_p3 }
  0x11   :  { %409 = shalt.err (!%p406_p7)
}
  0x12   :  { %42 = dma.hbm_to_vmem [thread:$0]  %s637_s1, 128, %s40_s22, [#allocation6]  }
  0x13   :  { %s410_s13 = scalar_lea.hbm %s636_s0, 32 }
  0x14   :  { %p411_p8 = scmp.ne.s32.totalorder %s636_s0, %s410_s13  ;;  %p414_p9 = scmp.lt.u32.totalorder %s410_s13, %s636_s0 }
  0x16   :  { %p416_p10 = pnand %p414_p9, %p411_p8 }
  0x18   :  { %419 = shalt.err (!%p416_p10)
}
  0x19   :  { %s420_s18 = scalar_lea.vmem %s26_s24, 32  ;;  %p425_p12 = scmp.lt.s32.totalorder %s26_s24, %s26_s24 }
  0x1a   :  { %p421_p11 = scmp.ne.s32.totalorder %s26_s24, %s420_s18  ;;  %p426_p13 = scmp.lt.s32.totalorder %s420_s18, %s420_s18 }
  0x1c   :  { %p427_p0 = por %p426_p13, %p425_p12 }
  0x1e   :  { %p428_p1 = pnand %p427_p0, %p421_p11 }
  0x20   :  { %431 = shalt.err (!%p428_p1)
}
  0x21   :  { %28 = dma.hbm_to_vmem [thread:$0]  %s636_s0, 32, %s26_s24, [#allocation3]  }
  0x22   :  { %s484_s20 = smov [#allocation7]   ;;  %s432_s25 = scalar_lea.hbm %s638_s2, 128 }
  0x23   :  { %s53_s21 = sshll.u32 %s484_s20, 4  ;;  %p433_p2 = scmp.ne.s32.totalorder %s638_s2, %s432_s25  ;;  %s54_s21 = int_to_ptr.vmem [resolvable:$true] %s53_s21 }
  0x24   :  { %p436_p3 = scmp.lt.u32.totalorder %s432_s25, %s638_s2 }
  0x26   :  { %p438_p4 = pnand %p436_p3, %p433_p2 }
  0x28   :  { %441 = shalt.err (!%p438_p4)
}
  0x29   :  { %s442_s30 = scalar_lea.vmem %s54_s21, 128  ;;  %p447_p6 = scmp.lt.s32.totalorder %s54_s21, %s54_s21 }
  0x2a   :  { %p443_p5 = scmp.ne.s32.totalorder %s54_s21, %s442_s30  ;;  %p448_p7 = scmp.lt.s32.totalorder %s442_s30, %s442_s30 }
  0x2c   :  { %p449_p8 = por %p448_p7, %p447_p6 }
  0x2e   :  { %p450_p9 = pnand %p449_p8, %p443_p5 }
  0x30   :  { %453 = shalt.err (!%p450_p9)
}
  0x31   :  { %56 = dma.hbm_to_vmem [thread:$0]  %s638_s2, 128, %s54_s21, [#allocation6]  }
  0x32   :  { %476 = dma.done.wait [#allocation3], 32  }
  0x33   :  { %477 = vsyncadd [#allocation3], 4294967264 }
  0x34   :  { %478 = dma.done.wait [#allocation6], 256  }
  0x35   :  { %479 = vsyncadd [#allocation6], 4294967040  ;;  %v109_v0 = vlaneseq  ;;  %vm81_vm0 = vcmask 0   ;;  %v485_v2 = vmov 0.0   ;;  %vm128_vm1 = vcmask 1043456   ;;  %v93_v7 = vld [vmem:[#allocation5] sm:$0xff] }
  0x36   :  { %82 = vst.msk [vmem:[#allocation8] sm:$0x1] %vm81_vm0, %v485_v2  ;;  %v103_v5 = vld [vmem:[#allocation7] sm:$0x77]  ;;  %v111_v6 = vld [vmem:[#allocation2] sm:$0x3]  ;;  %v99_v12 = vcombine.high %v93_v7, %v93_v7 }
  0x37   :  { %v559_v1 = vshrl.u32 %v109_v0, 7  ;;  %v105_v8 = vcombine.high %v103_v5, %v103_v5  ;;  %v244_v11 = vmul.f32 %v103_v5, %v103_v5  ;;  %v129_v13 = vsel %vm128_vm1, %v93_v7, -inf  ;;  %s487_s12 = smov [#allocation8]  }
  0x38   :  { %v130_v15 = vrot.slane %v129_v13, 4  ;;  %v486_v16 = vmov 1.0   ;;  %v136_v17 = vsel %vm128_vm1, %v99_v12, -inf  ;;  %vm76_vm4 = vcmask 19456   ;;  %s350_s13 = sshll.u32 %s487_s12, 4  ;;  %s351_s13 = int_to_ptr.vmem [resolvable:$true] %s350_s13 }
  0x39   :  { %v118_v3 = vsub.s32 1, %v559_v1  ;;  %v114_v4 = vsub.s32 0, %v559_v1  ;;  %170 = vmatprep.subr.mxu0 %v105_v8  ;;  %v245_v14 = vmul.f32 %v105_v8, %v105_v8  ;;  %v137_v19 = vrot.slane %v136_v17, 4  ;;  %77 = vst.msk [vmem:[%s639_s3] sm:$0xf] %vm76_vm4, %v485_v2  ;;  %s454_s16 = scalar_lea.vmem %s351_s13, 16  ;;  %p459_p11 = scmp.lt.s32.totalorder %s351_s13, %s351_s13 }
  0x3a   :  { %171 = vmatpush1.xpose.msra.mxu0 %v103_v5  ;;  %v131_v18 = vmax.f32 %v129_v13, %v130_v15  ;;  %78 = vst.msk [vmem:[%s640_s4] sm:$0xf] %vm76_vm4, %v485_v2  ;;  %vm79_vm5 = vcmask 3072   ;;  %p455_p10 = scmp.ne.s32.totalorder %s351_s13, %s454_s16  ;;  %s458_s17 = scalar_lea.vmem %s351_s13, 32 }
  0x3b   :  { %v119_v9 = vrot.slane %v111_v6, %v118_v3  ;;  %v115_v10 = vrot.slane %v111_v6, %v114_v4  ;;  %246 = vmatprep.subr.mxu1 %v245_v14  ;;  %v138_v21 = vmax.f32 %v136_v17, %v137_v19  ;;  %80 = vst.msk [vmem:[%s641_s5] sm:$0xf] %vm79_vm5, %v485_v2  ;;  %p460_p12 = scmp.lt.s32.totalorder %s458_s17, %s454_s16 }
  0x3c   :  { %247 = vmatpush1.xpose.msra.mxu1 %v244_v11  ;;  %v132_v20 = vrot.slane %v131_v18, 2 }
  0x3d   :  { %vm121_vm2 = vcmp.eq.s32.totalorder %v559_v1, %v119_v9  ;;  %vm120_vm3 = vcmp.eq.s32.totalorder %v559_v1, %v115_v10  ;;  %v139_v23 = vrot.slane %v138_v21, 2  ;;  %v329_v63 = vld [vmem:[#allocation8] sm:$0x1]  ;;  %p461_p13 = por %p460_p12, %p459_p11 }
  0x3e   :  { %368 = vmatprep.mubr.msk.f32.mxu0 %vm121_vm2, %v486_v16  ;;  %370 = vmatprep.mubr.msk.f32.mxu1 %vm121_vm2, %v486_v16  ;;  %v133_v22 = vmax.f32 %v131_v18, %v132_v20  ;;  %v367_v49 = vsel %vm121_vm2, 1.0, %v485_v2  ;;  %v366_v50 = vsel %vm120_vm3, 1.0, %v485_v2 }
  0x3f   :  { %369 = vmatmul.mubr.msk.f32.vlgmr.msra.gmra.mrb[0].mxu0 %vm120_vm3, %v486_v16  ;;  %371 = vmatmul.mubr.msk.f32.vlgmr.msra.gmra.mrb[0].mxu1 %vm120_vm3, %v486_v16  ;;  %v140_v25 = vmax.f32 %v138_v21, %v139_v23  ;;  %v319_v54 = vmul.f32 %v366_v50, %v93_v7  ;;  %v320_v55 = vmul.f32 %v367_v49, %v99_v12  ;;  %p462_p0 = pnand %p461_p13, %p455_p10 }
  0x40   :  { %v134_v24 = vrot.slane %v133_v22, 1 }
  0x41   :  { %v141_v27 = vrot.slane %v140_v25, 1  ;;  %v321_v59 = vsel %vm128_vm1, %v319_v54, 0.0  ;;  %v322_v60 = vsel %vm128_vm1, %v320_v55, 0.0 }
  0x42   :  { %v135_v26 = vmax.f32 %v133_v22, %v134_v24  ;;  %v323_v62 = vadd.f32 %v322_v60, %v321_v59  ;;  %v318_v3 = vld [vmem:[%s641_s5] sm:$0xf] }
  0x43   :  { %v142_v28 = vmax.f32 %v140_v25, %v141_v27 }
  0x44   :  { %v143_v29 = vsub.f32 %v93_v7, %v135_v26 }
  0x45   :  { %v144_v30 = vsub.f32 %v99_v12, %v142_v28 }
  0x46   :  { %v145_v31 = vmul.f32 1.442695, %v143_v29 }
  0x47   :  { %v147_v32 = vmul.f32 1.442695, %v144_v30 }
  0x48   :  { %380 = vpow2.f32 %v145_v31 }
  0x49   :  { %382 = vpow2.f32 %v147_v32 }
  0x52   :  { %v381_v33 = vpop.eup %380 }
  0x53   :  { %v149_v34 = vsel %vm128_vm1, %v381_v33, 0.0  ;;  %v383_v35 = vpop.eup %382 }
  0x54   :  { %v150_v36 = vrot.slane %v149_v34, 4  ;;  %v156_v37 = vsel %vm128_vm1, %v383_v35, 0.0 }
  0x55   :  { %v157_v39 = vrot.slane %v156_v37, 4 }
  0x56   :  { %v151_v38 = vadd.f32 %v150_v36, %v149_v34 }
  0x57   :  { %v158_v41 = vadd.f32 %v157_v39, %v156_v37 }
  0x58   :  { %v152_v40 = vrot.slane %v151_v38, 2 }
  0x59   :  { %v159_v43 = vrot.slane %v158_v41, 2 }
  0x5a   :  { %v153_v42 = vadd.f32 %v152_v40, %v151_v38 }
  0x5b   :  { %v160_v45 = vadd.f32 %v159_v43, %v158_v41 }
  0x5c   :  { %v154_v44 = vrot.slane %v153_v42, 1 }
  0x5d   :  { %v161_v47 = vrot.slane %v160_v45, 1 }
  0x5e   :  { %v155_v46 = vadd.f32 %v154_v44, %v153_v42 }
  0x5f   :  { %v162_v48 = vadd.f32 %v161_v47, %v160_v45 }
  0x60   :  { %384 = vlog2.f32 %v155_v46 }
  0x61   :  { %386 = vlog2.f32 %v162_v48 }
  0x6a   :  { %v385_v51 = vpop.eup %384 }
  0x6b   :  { %v164_v52 = vmul.f32 0.6931472, %v385_v51  ;;  %v387_v53 = vpop.eup %386 }
  0x6c   :  { %v166_v56 = vmul.f32 0.6931472, %v387_v53 }
  0x6d   :  { %v167_v57 = vadd.f32 %v164_v52, %v135_v26 }
  0x6e   :  { %v168_v58 = vadd.f32 %v166_v56, %v142_v28 }
  0x70   :  { %v332_v61 = vadd.f32 %v168_v58, %v167_v57 }
  0x72   :  { %333 = vadd.xlane.f32.xlu0 %v332_v61 }
  0x76   :  { %324 = vadd.xlane.f32.xlu0 %v323_v62 }
  0xff   :  { %v334_v0 = vpop.xlane.xlu0 %333 }
 0x100   :  { %v335_v1 = vadd.f32 %v334_v0, %v329_v63 }
 0x102   :  { %337 = vst.msk [vmem:[#allocation8] sm:$0x1] %vm81_vm0, %v335_v1 }
 0x103   :  { %v325_v4 = vpop.xlane.xlu0 %324 }
 0x104   :  { %465 = shalt.err (!%p462_p0)
}
 0x105   :  { %s466_s19 = scalar_lea.hbm %s642_s6, 16 }
 0x106   :  { %p467_p1 = scmp.ne.s32.totalorder %s642_s6, %s466_s19  ;;  %p470_p2 = scmp.lt.u32.totalorder %s466_s19, %s642_s6 }
 0x108   :  { %p472_p3 = pnand %p470_p2, %p467_p1 }
 0x10a   :  { %475 = shalt.err (!%p472_p3)
}
 0x10b   :  { %353 = dma.vmem_to_hbm [thread:$0]  %s351_s13, 16, %s642_s6, [#allocation4]   ;;  %v326_v2 = vadd.f32 %v325_v4, %v318_v3  ;;  %v169_v5 = vld [vmem:[%s639_s3] sm:$0xf] }
 0x10c   :  { %v243_v7 = vld [vmem:[%s640_s4] sm:$0xf] }
 0x10d   :  { %328 = vst.msk [vmem:[%s641_s5] sm:$0xf] %vm79_vm5, %v326_v2 }
 0x112   :  { %v236_v6 = vpop.f32.mrb[0].mxu0  ;;  %v312_v10 = vpop.f32.mrb[0].mxu1 }
 0x113   :  { %v240_v8 = vadd.f32 %v236_v6, %v169_v5  ;;  %v238_v9 = vpop.f32.mrb[1].mxu0  ;;  %v316_v11 = vadd.f32 %v312_v10, %v243_v7  ;;  %v314_v12 = vpop.f32.mrb[1].mxu1 }
 0x115   :  { %242 = vst.msk [vmem:[%s639_s3] sm:$0xf] %vm76_vm4, %v240_v8  ;;  %317 = vst.msk [vmem:[%s640_s4] sm:$0xf] %vm76_vm4, %v316_v11 }
 0x116   :  { %480 = dma.done.wait [#allocation4], 16  }
 0x117   :  { %481 = vsyncadd [#allocation4], 4294967280 }
 0x118   :  { %363 = vsyncpa [#allocation3], 1 }
 0x119   :  { %364 = vsyncpa [#allocation6], 1 }
 0x11a   :  { %365 = vsyncpa [#allocation4], 1 }

</bundles_post_ra>
